<compile_context>
chip_gen: v6e
topology: v6e:2x2x1
jax: 0.10.0
libtpu: 0.0.40
codegen_flags: <defaults>
</compile_context>

<pallas_src>
import functools

import jax
import jax.numpy as jnp
import numpy as np
from jax.experimental import pallas as pl
from jax.experimental.pallas import tpu as pltpu

LANE = 128
SUBLANE = 8
MAX_TILE_B = 256  # full MXU row pass on v6e/v7x; two passes on v5e


def _round_up(n, m):
    return ((n + m - 1) // m) * m


# ----------------------------------------------------------------------------
# Pallas kernel: several fused MLPs sharing one input tile
# ----------------------------------------------------------------------------
def _multi_mlp_kernel(layer_counts, x_ref, *refs):
    """refs = (w0, b0, w1, b1, ... per net ..., out_ref_net0, out_ref_net1, ...).

    Each net is a stack of Linear layers with ELU between them; all nets read
    the same input tile.  Weights are bf16 (in, out); biases are f32 (1, out);
    accumulation is f32 on the MXU.
    """
    n_param_refs = 2 * sum(layer_counts)
    param_refs = refs[:n_param_refs]
    out_refs = refs[n_param_refs:]

    x = x_ref[...]
    p = 0
    for net_idx, n_layers in enumerate(layer_counts):
        h = x
        for l in range(n_layers):
            w_ref, b_ref = param_refs[p], param_refs[p + 1]
            p += 2
            h = (
                jnp.dot(
                    h.astype(jnp.bfloat16),
                    w_ref[...],
                    preferred_element_type=jnp.float32,
                )
                + b_ref[...]
            )
            if l < n_layers - 1:
                # ELU(alpha=1): x if x > 0 else exp(x) - 1 (clamp exp arg <= 0).
                h = jnp.where(h > 0.0, h, jnp.exp(jnp.minimum(h, 0.0)) - 1.0)
        out_refs[net_idx][...] = h.astype(out_refs[net_idx].dtype)


# ----------------------------------------------------------------------------
# Pallas-call wrapper: batch grid, resident weights, padded lane-dense outputs
# ----------------------------------------------------------------------------
def _fused_mlp_forward(x, nets, out_dims):
    """Evaluate several MLPs on the same input in one pallas_call.

    x:        (B, in_dim) float32.
    nets:     list of (weights, biases) from _prepare_net: weights bf16
              (in, out); biases f32 (1, out); first-layer in and last-layer out
              already padded to multiples of 128.
    out_dims: true (unpadded) output dims, one per net.
    Returns:  list of (B, out_dims[i]) float32 arrays.
    """
    batch, in_dim = x.shape
    in_pad = nets[0][0][0].shape[0]
    for ws, _ in nets:
        assert ws[0].shape[0] == in_pad, "fused nets must share the input width"
    assert in_dim <= in_pad

    tile_b = MAX_TILE_B if batch >= MAX_TILE_B else _round_up(max(batch, 1), SUBLANE)
    b_pad = _round_up(batch, tile_b)
    grid = (b_pad // tile_b,)

    x_p = jnp.zeros((b_pad, in_pad), jnp.float32).at[:batch, :in_dim].set(
        x.astype(jnp.float32)
    )

    # Flatten params in kernel order; constant index_maps keep them resident.
    flat_params, param_specs, layer_counts = [], [], []
    for ws, bs in nets:
        layer_counts.append(len(ws))
        for w, b in zip(ws, bs):
            flat_params += [w, b]
            param_specs += [
                pl.BlockSpec(w.shape, lambda i: (0, 0)),
                pl.BlockSpec(b.shape, lambda i: (0, 0)),
            ]

    out_pads = [ws[-1].shape[1] for ws, _ in nets]
    out_shape = tuple(
        jax.ShapeDtypeStruct((b_pad, op), jnp.float32) for op in out_pads
    )
    out_specs = tuple(
        pl.BlockSpec((tile_b, op), lambda i: (i, 0)) for op in out_pads
    )

    # Advisory cost estimate for XLA's scheduler.
    flops = 0
    transcendentals = 0
    bytes_accessed = x_p.size * x_p.dtype.itemsize
    for (ws, bs), op in zip(nets, out_pads):
        for l, (w, b) in enumerate(zip(ws, bs)):
            flops += 2 * b_pad * w.shape[0] * w.shape[1]
            if l < len(ws) - 1:
                transcendentals += b_pad * w.shape[1]
            bytes_accessed += w.size * w.dtype.itemsize + b.size * b.dtype.itemsize
        bytes_accessed += b_pad * op * 4

    kernel = functools.partial(_multi_mlp_kernel, tuple(layer_counts))

    outs = pl.pallas_call(
        kernel,
        out_shape=out_shape,
        grid=grid,
        in_specs=[pl.BlockSpec((tile_b, in_pad), lambda i: (i, 0))] + param_specs,
        out_specs=out_specs,
        compiler_params=pltpu.CompilerParams(
            dimension_semantics=("parallel",),
            vmem_limit_bytes=32 * 1024 * 1024,
        ),
        cost_estimate=pl.CostEstimate(
            flops=flops,
            transcendentals=transcendentals,
            bytes_accessed=bytes_accessed,
        ),
    )(x_p, *flat_params)

    return [o[:batch, :d] for o, d in zip(outs, out_dims)]


# ----------------------------------------------------------------------------
# Parameter construction (deterministic, mimics nn.Linear shapes) & preparation
# ----------------------------------------------------------------------------
def _init_linear(key, in_dim, out_dim):
    kw, kb = jax.random.split(key)
    bound = 1.0 / np.sqrt(in_dim)
    # stored as (in, out) — i.e. PyTorch weight.T — so the hot path is h @ W + b.
    w = jax.random.uniform(kw, (in_dim, out_dim), jnp.float32, -bound, bound)
    b = jax.random.uniform(kb, (1, out_dim), jnp.float32, -bound, bound)
    return w, b


def build_actor_critic_params(
    key,
    num_actor_obs,
    num_critic_obs,
    num_actions,
    actor_hidden_dims=(256, 256, 256),
    critic_hidden_dims=(256, 256, 256),
    base_lin_vel_hidden_dims=(128, 128),
    init_noise_std=1.0,
):
    def build_mlp(key, in_dim, hidden_dims, out_dim):
        dims = [in_dim] + list(hidden_dims) + [out_dim]
        ws, bs = [], []
        for i in range(len(dims) - 1):
            key, sub = jax.random.split(key)
            w, b = _init_linear(sub, dims[i], dims[i + 1])
            ws.append(w)
            bs.append(b)
        return key, ws, bs

    key, actor_w, actor_b = build_mlp(key, num_actor_obs, actor_hidden_dims, num_actions)
    key, lv_w, lv_b = build_mlp(key, num_actor_obs, base_lin_vel_hidden_dims, 3)
    key, critic_w, critic_b = build_mlp(key, num_critic_obs, critic_hidden_dims, 1)
    std = init_noise_std * jnp.ones((num_actions,), jnp.float32)
    return {
        "actor": (actor_w, actor_b),
        "base_lin_vel": (lv_w, lv_b),
        "critic": (critic_w, critic_b),
        "std": std,
    }


def _prepare_net(weights, biases):
    """Pad first-layer input rows and last-layer output cols to multiples of 128;
    cast weights to bf16 (biases stay f32, zero-padded)."""
    n_layers = len(weights)
    ws, bs = [], []
    for l, (w, b) in enumerate(zip(weights, biases)):
        in_dim, out_dim = w.shape
        in_pad = _round_up(in_dim, LANE) if l == 0 else in_dim
        out_pad = _round_up(out_dim, LANE) if l == n_layers - 1 else out_dim
        w_p = jnp.zeros((in_pad, out_pad), jnp.float32).at[:in_dim, :out_dim].set(w)
        b_p = jnp.zeros((1, out_pad), jnp.float32).at[:, :out_dim].set(b)
        ws.append(w_p.astype(jnp.bfloat16))
        bs.append(b_p)
    return ws, bs


def prepare_params(params):
    return {
        "actor": _prepare_net(*params["actor"]),
        "base_lin_vel": _prepare_net(*params["base_lin_vel"]),
        "critic": _prepare_net(*params["critic"]),
        "actor_out": params["actor"][0][-1].shape[1],
        "lin_vel_out": params["base_lin_vel"][0][-1].shape[1],
        "critic_out": params["critic"][0][-1].shape[1],
        "std": params["std"],
    }


# ----------------------------------------------------------------------------
# ActorCritic forward entry points (Pallas-backed)
# ----------------------------------------------------------------------------
def _actor_and_lin_vel(prep, observations):
    # actor and base_lin_vel share the observations: one launch, one obs DMA.
    return _fused_mlp_forward(
        observations,
        [prep["actor"], prep["base_lin_vel"]],
        [prep["actor_out"], prep["lin_vel_out"]],
    )


def act_inference(prep, observations):
    return _actor_and_lin_vel(prep, observations)[0]


def base_get_lin_vel(prep, observations):
    return _actor_and_lin_vel(prep, observations)[1]


def evaluate(prep, critic_observations):
    (value,) = _fused_mlp_forward(
        critic_observations, [prep["critic"]], [prep["critic_out"]]
    )
    return value


def act(prep, observations, rng):
    # TODO(synk): Normal-distribution sampling / log_prob / entropy are RNG and
    #             statistics glue, not kernel compute; sampling stays outside Pallas.
    mean, lin_vel = _actor_and_lin_vel(prep, observations)
    action = mean + prep["std"] * jax.random.normal(rng, mean.shape, mean.dtype)
    return action, lin_vel


# ----------------------------------------------------------------------------
# Pure-JAX reference (mirrors the kernel's bf16 weight storage)
# ----------------------------------------------------------------------------
def _ref_mlp(x, weights, biases):
    h = x
    for l, (w, b) in enumerate(zip(weights, biases)):
        w32 = w.astype(jnp.bfloat16).astype(jnp.float32)
        h = h @ w32 + b
        if l < len(weights) - 1:
            h = jnp.where(h > 0.0, h, jnp.exp(jnp.minimum(h, 0.0)) - 1.0)
    return h


if __name__ == "__main__":
    batch = 2
    num_actor_obs = 32
    num_critic_obs = 48
    num_actions = 8

    key = jax.random.PRNGKey(0)
    key, kp, ka, kc, kg = jax.random.split(key, 5)

    raw = build_actor_critic_params(kp, num_actor_obs, num_critic_obs, num_actions)
    prep = prepare_params(raw)

    actor_obs = jax.random.normal(ka, (batch, num_actor_obs), jnp.float32)
    critic_obs = jax.random.normal(kc, (batch, num_critic_obs), jnp.float32)

    action_mean = jax.block_until_ready(act_inference(prep, actor_obs))
    lin_vel = jax.block_until_ready(base_get_lin_vel(prep, actor_obs))
    value = jax.block_until_ready(evaluate(prep, critic_obs))

    # Shape checks
    assert action_mean.shape == (batch, num_actions)
    assert lin_vel.shape == (batch, 3)
    assert value.shape == (batch, 1)

    # Numerical checks against the pure-JAX reference (bf16 weights, f32 accum)
    ref_mean = _ref_mlp(actor_obs, *raw["actor"])
    ref_lv = _ref_mlp(actor_obs, *raw["base_lin_vel"])
    ref_val = _ref_mlp(critic_obs, *raw["critic"])
    assert jnp.allclose(action_mean, ref_mean, atol=2e-2, rtol=2e-2)
    assert jnp.allclose(lin_vel, ref_lv, atol=2e-2, rtol=2e-2)
    assert jnp.allclose(value, ref_val, atol=2e-2, rtol=2e-2)

    # Exercise the multi-tile batch grid (2 tiles of 256 rows, ragged tail).
    big_b = 384
    big_obs = jax.random.normal(kg, (big_b, num_actor_obs), jnp.float32)
    big_mean, big_lv = _actor_and_lin_vel(prep, big_obs)
    jax.block_until_ready((big_mean, big_lv))
    assert big_mean.shape == (big_b, num_actions) and big_lv.shape == (big_b, 3)
    assert jnp.allclose(big_mean, _ref_mlp(big_obs, *raw["actor"]), atol=2e-2, rtol=2e-2)
    assert jnp.allclose(big_lv, _ref_mlp(big_obs, *raw["base_lin_vel"]), atol=2e-2, rtol=2e-2)

    print("KERNEL_OK")
</pallas_src>

<mosaic_0001>
module attributes {stable_mosaic.version = 11 : i64} {
  func.func @_multi_mlp_kernel(%arg0: i32, %arg1: memref<8x128xf32, #tpu.memory_space<vmem>>, %arg2: memref<128x256xbf16, #tpu.memory_space<vmem>>, %arg3: memref<1x256xf32, #tpu.memory_space<vmem>>, %arg4: memref<256x256xbf16, #tpu.memory_space<vmem>>, %arg5: memref<1x256xf32, #tpu.memory_space<vmem>>, %arg6: memref<256x256xbf16, #tpu.memory_space<vmem>>, %arg7: memref<1x256xf32, #tpu.memory_space<vmem>>, %arg8: memref<256x128xbf16, #tpu.memory_space<vmem>>, %arg9: memref<1x128xf32, #tpu.memory_space<vmem>>, %arg10: memref<128x128xbf16, #tpu.memory_space<vmem>>, %arg11: memref<1x128xf32, #tpu.memory_space<vmem>>, %arg12: memref<128x128xbf16, #tpu.memory_space<vmem>>, %arg13: memref<1x128xf32, #tpu.memory_space<vmem>>, %arg14: memref<128x128xbf16, #tpu.memory_space<vmem>>, %arg15: memref<1x128xf32, #tpu.memory_space<vmem>>, %arg16: memref<8x128xf32, #tpu.memory_space<vmem>>, %arg17: memref<8x128xf32, #tpu.memory_space<vmem>>) attributes {dimension_semantics = [#tpu.dimension_semantics<parallel>], iteration_bounds = array<i64: 1>, scalar_prefetch = 0 : i64, scratch_operands = 0 : i64, tpu.core_type = #tpu.core_type<tc>, window_params = [{transform_indices = @transform_0, window_bounds = array<i64: 8, 128>}, {pipeline_mode = #tpu.pipeline_mode<synchronous>, transform_indices = @transform_1, window_bounds = array<i64: 128, 256>}, {pipeline_mode = #tpu.pipeline_mode<synchronous>, transform_indices = @transform_2, window_bounds = array<i64: 1, 256>}, {pipeline_mode = #tpu.pipeline_mode<synchronous>, transform_indices = @transform_3, window_bounds = array<i64: 256, 256>}, {pipeline_mode = #tpu.pipeline_mode<synchronous>, transform_indices = @transform_4, window_bounds = array<i64: 1, 256>}, {pipeline_mode = #tpu.pipeline_mode<synchronous>, transform_indices = @transform_5, window_bounds = array<i64: 256, 256>}, {pipeline_mode = #tpu.pipeline_mode<synchronous>, transform_indices = @transform_6, window_bounds = array<i64: 1, 256>}, {pipeline_mode = #tpu.pipeline_mode<synchronous>, transform_indices = @transform_7, window_bounds = array<i64: 256, 128>}, {pipeline_mode = #tpu.pipeline_mode<synchronous>, transform_indices = @transform_8, window_bounds = array<i64: 1, 128>}, {pipeline_mode = #tpu.pipeline_mode<synchronous>, transform_indices = @transform_9, window_bounds = array<i64: 128, 128>}, {pipeline_mode = #tpu.pipeline_mode<synchronous>, transform_indices = @transform_10, window_bounds = array<i64: 1, 128>}, {pipeline_mode = #tpu.pipeline_mode<synchronous>, transform_indices = @transform_11, window_bounds = array<i64: 128, 128>}, {pipeline_mode = #tpu.pipeline_mode<synchronous>, transform_indices = @transform_12, window_bounds = array<i64: 1, 128>}, {pipeline_mode = #tpu.pipeline_mode<synchronous>, transform_indices = @transform_13, window_bounds = array<i64: 128, 128>}, {pipeline_mode = #tpu.pipeline_mode<synchronous>, transform_indices = @transform_14, window_bounds = array<i64: 1, 128>}, {transform_indices = @transform_15, window_bounds = array<i64: 8, 128>}, {transform_indices = @transform_16, window_bounds = array<i64: 8, 128>}]} {
    %c0 = arith.constant 0 : index
    %c0_0 = arith.constant 0 : index
    %0 = vector.load %arg1[%c0, %c0_0] : memref<8x128xf32, #tpu.memory_space<vmem>>, vector<8x128xf32>
    %1 = arith.truncf %0 : vector<8x128xf32> to vector<8x128xbf16>
    %c0_1 = arith.constant 0 : index
    %c0_2 = arith.constant 0 : index
    %2 = vector.load %arg2[%c0_1, %c0_2] : memref<128x256xbf16, #tpu.memory_space<vmem>>, vector<128x256xbf16>
    %cst = arith.constant dense<0.000000e+00> : vector<8x256xf32>
    %3 = tpu.matmul %1, %2, %cst {dimension_numbers = #tpu.dot_dimension_numbers<[1], [0], [0], [1], [0, 0, 1, 1], [], []>} : vector<8x128xbf16>, vector<128x256xbf16>, vector<8x256xf32> -> vector<8x256xf32>
    %c0_3 = arith.constant 0 : index
    %c0_4 = arith.constant 0 : index
    %4 = vector.load %arg3[%c0_3, %c0_4] : memref<1x256xf32, #tpu.memory_space<vmem>>, vector<1x256xf32>
    %5 = vector.broadcast %4 : vector<1x256xf32> to vector<8x256xf32>
    %6 = arith.addf %3, %5 : vector<8x256xf32>
    %cst_5 = arith.constant 0.000000e+00 : f32
    %7 = vector.broadcast %cst_5 : f32 to vector<8x256xf32>
    %8 = arith.cmpf ogt, %6, %7 : vector<8x256xf32>
    %cst_6 = arith.constant 0.000000e+00 : f32
    %9 = vector.broadcast %cst_6 : f32 to vector<8x256xf32>
    %10 = arith.minimumf %6, %9 : vector<8x256xf32>
    %11 = math.exp %10 : vector<8x256xf32>
    %cst_7 = arith.constant 1.000000e+00 : f32
    %12 = vector.broadcast %cst_7 : f32 to vector<8x256xf32>
    %13 = arith.subf %11, %12 : vector<8x256xf32>
    %14 = arith.select %8, %6, %13 : vector<8x256xi1>, vector<8x256xf32>
    %15 = arith.truncf %14 : vector<8x256xf32> to vector<8x256xbf16>
    %c0_8 = arith.constant 0 : index
    %c0_9 = arith.constant 0 : index
    %16 = vector.load %arg4[%c0_8, %c0_9] : memref<256x256xbf16, #tpu.memory_space<vmem>>, vector<256x256xbf16>
    %cst_10 = arith.constant dense<0.000000e+00> : vector<8x256xf32>
    %17 = tpu.matmul %15, %16, %cst_10 {dimension_numbers = #tpu.dot_dimension_numbers<[1], [0], [0], [1], [0, 0, 1, 1], [], []>} : vector<8x256xbf16>, vector<256x256xbf16>, vector<8x256xf32> -> vector<8x256xf32>
    %c0_11 = arith.constant 0 : index
    %c0_12 = arith.constant 0 : index
    %18 = vector.load %arg5[%c0_11, %c0_12] : memref<1x256xf32, #tpu.memory_space<vmem>>, vector<1x256xf32>
    %19 = vector.broadcast %18 : vector<1x256xf32> to vector<8x256xf32>
    %20 = arith.addf %17, %19 : vector<8x256xf32>
    %cst_13 = arith.constant 0.000000e+00 : f32
    %21 = vector.broadcast %cst_13 : f32 to vector<8x256xf32>
    %22 = arith.cmpf ogt, %20, %21 : vector<8x256xf32>
    %cst_14 = arith.constant 0.000000e+00 : f32
    %23 = vector.broadcast %cst_14 : f32 to vector<8x256xf32>
    %24 = arith.minimumf %20, %23 : vector<8x256xf32>
    %25 = math.exp %24 : vector<8x256xf32>
    %cst_15 = arith.constant 1.000000e+00 : f32
    %26 = vector.broadcast %cst_15 : f32 to vector<8x256xf32>
    %27 = arith.subf %25, %26 : vector<8x256xf32>
    %28 = arith.select %22, %20, %27 : vector<8x256xi1>, vector<8x256xf32>
    %29 = arith.truncf %28 : vector<8x256xf32> to vector<8x256xbf16>
    %c0_16 = arith.constant 0 : index
    %c0_17 = arith.constant 0 : index
    %30 = vector.load %arg6[%c0_16, %c0_17] : memref<256x256xbf16, #tpu.memory_space<vmem>>, vector<256x256xbf16>
    %cst_18 = arith.constant dense<0.000000e+00> : vector<8x256xf32>
    %31 = tpu.matmul %29, %30, %cst_18 {dimension_numbers = #tpu.dot_dimension_numbers<[1], [0], [0], [1], [0, 0, 1, 1], [], []>} : vector<8x256xbf16>, vector<256x256xbf16>, vector<8x256xf32> -> vector<8x256xf32>
    %c0_19 = arith.constant 0 : index
    %c0_20 = arith.constant 0 : index
    %32 = vector.load %arg7[%c0_19, %c0_20] : memref<1x256xf32, #tpu.memory_space<vmem>>, vector<1x256xf32>
    %33 = vector.broadcast %32 : vector<1x256xf32> to vector<8x256xf32>
    %34 = arith.addf %31, %33 : vector<8x256xf32>
    %cst_21 = arith.constant 0.000000e+00 : f32
    %35 = vector.broadcast %cst_21 : f32 to vector<8x256xf32>
    %36 = arith.cmpf ogt, %34, %35 : vector<8x256xf32>
    %cst_22 = arith.constant 0.000000e+00 : f32
    %37 = vector.broadcast %cst_22 : f32 to vector<8x256xf32>
    %38 = arith.minimumf %34, %37 : vector<8x256xf32>
    %39 = math.exp %38 : vector<8x256xf32>
    %cst_23 = arith.constant 1.000000e+00 : f32
    %40 = vector.broadcast %cst_23 : f32 to vector<8x256xf32>
    %41 = arith.subf %39, %40 : vector<8x256xf32>
    %42 = arith.select %36, %34, %41 : vector<8x256xi1>, vector<8x256xf32>
    %43 = arith.truncf %42 : vector<8x256xf32> to vector<8x256xbf16>
    %c0_24 = arith.constant 0 : index
    %c0_25 = arith.constant 0 : index
    %44 = vector.load %arg8[%c0_24, %c0_25] : memref<256x128xbf16, #tpu.memory_space<vmem>>, vector<256x128xbf16>
    %cst_26 = arith.constant dense<0.000000e+00> : vector<8x128xf32>
    %45 = tpu.matmul %43, %44, %cst_26 {dimension_numbers = #tpu.dot_dimension_numbers<[1], [0], [0], [1], [0, 0, 1, 1], [], []>} : vector<8x256xbf16>, vector<256x128xbf16>, vector<8x128xf32> -> vector<8x128xf32>
    %c0_27 = arith.constant 0 : index
    %c0_28 = arith.constant 0 : index
    %46 = vector.load %arg9[%c0_27, %c0_28] : memref<1x128xf32, #tpu.memory_space<vmem>>, vector<1x128xf32>
    %47 = vector.broadcast %46 : vector<1x128xf32> to vector<8x128xf32>
    %48 = arith.addf %45, %47 : vector<8x128xf32>
    %c0_29 = arith.constant 0 : index
    %c0_30 = arith.constant 0 : index
    %49 = vector.load %arg16[%c0_29, %c0_30] : memref<8x128xf32, #tpu.memory_space<vmem>>, vector<8x128xf32>
    tpu.vector_store %arg16[%c0_29, %c0_30], %48 {strides = array<i32>} : memref<8x128xf32, #tpu.memory_space<vmem>>, vector<8x128xf32>,
    %50 = arith.truncf %0 : vector<8x128xf32> to vector<8x128xbf16>
    %c0_31 = arith.constant 0 : index
    %c0_32 = arith.constant 0 : index
    %51 = vector.load %arg10[%c0_31, %c0_32] : memref<128x128xbf16, #tpu.memory_space<vmem>>, vector<128x128xbf16>
    %cst_33 = arith.constant dense<0.000000e+00> : vector<8x128xf32>
    %52 = tpu.matmul %50, %51, %cst_33 {dimension_numbers = #tpu.dot_dimension_numbers<[1], [0], [0], [1], [0, 0, 1, 1], [], []>} : vector<8x128xbf16>, vector<128x128xbf16>, vector<8x128xf32> -> vector<8x128xf32>
    %c0_34 = arith.constant 0 : index
    %c0_35 = arith.constant 0 : index
    %53 = vector.load %arg11[%c0_34, %c0_35] : memref<1x128xf32, #tpu.memory_space<vmem>>, vector<1x128xf32>
    %54 = vector.broadcast %53 : vector<1x128xf32> to vector<8x128xf32>
    %55 = arith.addf %52, %54 : vector<8x128xf32>
    %cst_36 = arith.constant 0.000000e+00 : f32
    %56 = vector.broadcast %cst_36 : f32 to vector<8x128xf32>
    %57 = arith.cmpf ogt, %55, %56 : vector<8x128xf32>
    %cst_37 = arith.constant 0.000000e+00 : f32
    %58 = vector.broadcast %cst_37 : f32 to vector<8x128xf32>
    %59 = arith.minimumf %55, %58 : vector<8x128xf32>
    %60 = math.exp %59 : vector<8x128xf32>
    %cst_38 = arith.constant 1.000000e+00 : f32
    %61 = vector.broadcast %cst_38 : f32 to vector<8x128xf32>
    %62 = arith.subf %60, %61 : vector<8x128xf32>
    %63 = arith.select %57, %55, %62 : vector<8x128xi1>, vector<8x128xf32>
    %64 = arith.truncf %63 : vector<8x128xf32> to vector<8x128xbf16>
    %c0_39 = arith.constant 0 : index
    %c0_40 = arith.constant 0 : index
    %65 = vector.load %arg12[%c0_39, %c0_40] : memref<128x128xbf16, #tpu.memory_space<vmem>>, vector<128x128xbf16>
    %cst_41 = arith.constant dense<0.000000e+00> : vector<8x128xf32>
    %66 = tpu.matmul %64, %65, %cst_41 {dimension_numbers = #tpu.dot_dimension_numbers<[1], [0], [0], [1], [0, 0, 1, 1], [], []>} : vector<8x128xbf16>, vector<128x128xbf16>, vector<8x128xf32> -> vector<8x128xf32>
    %c0_42 = arith.constant 0 : index
    %c0_43 = arith.constant 0 : index
    %67 = vector.load %arg13[%c0_42, %c0_43] : memref<1x128xf32, #tpu.memory_space<vmem>>, vector<1x128xf32>
    %68 = vector.broadcast %67 : vector<1x128xf32> to vector<8x128xf32>
    %69 = arith.addf %66, %68 : vector<8x128xf32>
    %cst_44 = arith.constant 0.000000e+00 : f32
    %70 = vector.broadcast %cst_44 : f32 to vector<8x128xf32>
    %71 = arith.cmpf ogt, %69, %70 : vector<8x128xf32>
    %cst_45 = arith.constant 0.000000e+00 : f32
    %72 = vector.broadcast %cst_45 : f32 to vector<8x128xf32>
    %73 = arith.minimumf %69, %72 : vector<8x128xf32>
    %74 = math.exp %73 : vector<8x128xf32>
    %cst_46 = arith.constant 1.000000e+00 : f32
    %75 = vector.broadcast %cst_46 : f32 to vector<8x128xf32>
    %76 = arith.subf %74, %75 : vector<8x128xf32>
    %77 = arith.select %71, %69, %76 : vector<8x128xi1>, vector<8x128xf32>
    %78 = arith.truncf %77 : vector<8x128xf32> to vector<8x128xbf16>
    %c0_47 = arith.constant 0 : index
    %c0_48 = arith.constant 0 : index
    %79 = vector.load %arg14[%c0_47, %c0_48] : memref<128x128xbf16, #tpu.memory_space<vmem>>, vector<128x128xbf16>
    %cst_49 = arith.constant dense<0.000000e+00> : vector<8x128xf32>
    %80 = tpu.matmul %78, %79, %cst_49 {dimension_numbers = #tpu.dot_dimension_numbers<[1], [0], [0], [1], [0, 0, 1, 1], [], []>} : vector<8x128xbf16>, vector<128x128xbf16>, vector<8x128xf32> -> vector<8x128xf32>
    %c0_50 = arith.constant 0 : index
    %c0_51 = arith.constant 0 : index
    %81 = vector.load %arg15[%c0_50, %c0_51] : memref<1x128xf32, #tpu.memory_space<vmem>>, vector<1x128xf32>
    %82 = vector.broadcast %81 : vector<1x128xf32> to vector<8x128xf32>
    %83 = arith.addf %80, %82 : vector<8x128xf32>
    %c0_52 = arith.constant 0 : index
    %c0_53 = arith.constant 0 : index
    %84 = vector.load %arg17[%c0_52, %c0_53] : memref<8x128xf32, #tpu.memory_space<vmem>>, vector<8x128xf32>
    tpu.vector_store %arg17[%c0_52, %c0_53], %83 {strides = array<i32>} : memref<8x128xf32, #tpu.memory_space<vmem>>, vector<8x128xf32>,
    return
  }
  func.func @transform_0(%arg0: i32) -> (i32, i32) {
    %c0_i32 = arith.constant 0 : i32
    %c0_i32_0 = arith.constant 0 : i32
    return %arg0, %c0_i32 : i32, i32
  }
  func.func @transform_1(%arg0: i32) -> (i32, i32) {
    %c0_i32 = arith.constant 0 : i32
    %c0_i32_0 = arith.constant 0 : i32
    %c0_i32_1 = arith.constant 0 : i32
    return %c0_i32, %c0_i32_0 : i32, i32
  }
  func.func @transform_2(%arg0: i32) -> (i32, i32) {
    %c0_i32 = arith.constant 0 : i32
    %c0_i32_0 = arith.constant 0 : i32
    %c0_i32_1 = arith.constant 0 : i32
    return %c0_i32, %c0_i32_0 : i32, i32
  }
  func.func @transform_3(%arg0: i32) -> (i32, i32) {
    %c0_i32 = arith.constant 0 : i32
    %c0_i32_0 = arith.constant 0 : i32
    %c0_i32_1 = arith.constant 0 : i32
    return %c0_i32, %c0_i32_0 : i32, i32
  }
  func.func @transform_4(%arg0: i32) -> (i32, i32) {
    %c0_i32 = arith.constant 0 : i32
    %c0_i32_0 = arith.constant 0 : i32
    %c0_i32_1 = arith.constant 0 : i32
    return %c0_i32, %c0_i32_0 : i32, i32
  }
  func.func @transform_5(%arg0: i32) -> (i32, i32) {
    %c0_i32 = arith.constant 0 : i32
    %c0_i32_0 = arith.constant 0 : i32
    %c0_i32_1 = arith.constant 0 : i32
    return %c0_i32, %c0_i32_0 : i32, i32
  }
  func.func @transform_6(%arg0: i32) -> (i32, i32) {
    %c0_i32 = arith.constant 0 : i32
    %c0_i32_0 = arith.constant 0 : i32
    %c0_i32_1 = arith.constant 0 : i32
    return %c0_i32, %c0_i32_0 : i32, i32
  }
  func.func @transform_7(%arg0: i32) -> (i32, i32) {
    %c0_i32 = arith.constant 0 : i32
    %c0_i32_0 = arith.constant 0 : i32
    %c0_i32_1 = arith.constant 0 : i32
    return %c0_i32, %c0_i32_0 : i32, i32
  }
  func.func @transform_8(%arg0: i32) -> (i32, i32) {
    %c0_i32 = arith.constant 0 : i32
    %c0_i32_0 = arith.constant 0 : i32
    %c0_i32_1 = arith.constant 0 : i32
    return %c0_i32, %c0_i32_0 : i32, i32
  }
  func.func @transform_9(%arg0: i32) -> (i32, i32) {
    %c0_i32 = arith.constant 0 : i32
    %c0_i32_0 = arith.constant 0 : i32
    %c0_i32_1 = arith.constant 0 : i32
    return %c0_i32, %c0_i32_0 : i32, i32
  }
  func.func @transform_10(%arg0: i32) -> (i32, i32) {
    %c0_i32 = arith.constant 0 : i32
    %c0_i32_0 = arith.constant 0 : i32
    %c0_i32_1 = arith.constant 0 : i32
    return %c0_i32, %c0_i32_0 : i32, i32
  }
  func.func @transform_11(%arg0: i32) -> (i32, i32) {
    %c0_i32 = arith.constant 0 : i32
    %c0_i32_0 = arith.constant 0 : i32
    %c0_i32_1 = arith.constant 0 : i32
    return %c0_i32, %c0_i32_0 : i32, i32
  }
  func.func @transform_12(%arg0: i32) -> (i32, i32) {
    %c0_i32 = arith.constant 0 : i32
    %c0_i32_0 = arith.constant 0 : i32
    %c0_i32_1 = arith.constant 0 : i32
    return %c0_i32, %c0_i32_0 : i32, i32
  }
  func.func @transform_13(%arg0: i32) -> (i32, i32) {
    %c0_i32 = arith.constant 0 : i32
    %c0_i32_0 = arith.constant 0 : i32
    %c0_i32_1 = arith.constant 0 : i32
    return %c0_i32, %c0_i32_0 : i32, i32
  }
  func.func @transform_14(%arg0: i32) -> (i32, i32) {
    %c0_i32 = arith.constant 0 : i32
    %c0_i32_0 = arith.constant 0 : i32
    %c0_i32_1 = arith.constant 0 : i32
    return %c0_i32, %c0_i32_0 : i32, i32
  }
  func.func @transform_15(%arg0: i32) -> (i32, i32) {
    %c0_i32 = arith.constant 0 : i32
    %c0_i32_0 = arith.constant 0 : i32
    return %arg0, %c0_i32 : i32, i32
  }
  func.func @transform_16(%arg0: i32) -> (i32, i32) {
    %c0_i32 = arith.constant 0 : i32
    %c0_i32_0 = arith.constant 0 : i32
    return %arg0, %c0_i32 : i32, i32
  }
}

</mosaic_0001>

<bundles_post_ra>
// kernel: tpu_custom_call.1
= control target key start
LH: loop header
LB: loop body
LE: loop exit
PB: predicated region body
PF: predicated region fallthrough
CT: control target
= control target key end

     0   :  { %s2268_s0 = inlined_call_operand.hbm [shape: f32[8,128], index: 0, kind: input, shape index: {}]   ;;  %s2269_s1 = inlined_call_operand.hbm [shape: bf16[128,256], index: 1, kind: input, shape index: {}]   ;;  %s2270_s2 = inlined_call_operand.vmem [shape: f32[1,256], index: 2, kind: input, shape index: {}]   ;;  %s2271_s3 = inlined_call_operand.hbm [shape: bf16[256,256], index: 3, kind: input, shape index: {}]   ;;  %s2272_s4 = inlined_call_operand.vmem [shape: f32[1,256], index: 4, kind: input, shape index: {}]   ;;  %s2273_s5 = inlined_call_operand.hbm [shape: bf16[256,256], index: 5, kind: input, shape index: {}]   ;;  %s2274_s6 = inlined_call_operand.vmem [shape: f32[1,256], index: 6, kind: input, shape index: {}]   ;;  %s2275_s7 = inlined_call_operand.hbm [shape: bf16[256,128], index: 7, kind: input, shape index: {}]   ;;  %s2276_s8 = inlined_call_operand.vmem [shape: f32[1,128], index: 8, kind: input, shape index: {}]   ;;  %s2277_s9 = inlined_call_operand.hbm [shape: bf16[128,128], index: 9, kind: input, shape index: {}]   ;;  %s2278_s10 = inlined_call_operand.vmem [shape: f32[1,128], index: 10, kind: input, shape index: {}]   ;;  %s2279_s11 = inlined_call_operand.hbm [shape: bf16[128,128], index: 11, kind: input, shape index: {}]   ;;  %s2280_s12 = inlined_call_operand.vmem [shape: f32[1,128], index: 12, kind: input, shape index: {}]   ;;  %s2281_s13 = inlined_call_operand.hbm [shape: bf16[128,128], index: 13, kind: input, shape index: {}]   ;;  %s2282_s14 = inlined_call_operand.vmem [shape: f32[1,128], index: 14, kind: input, shape index: {}]   ;;  %s2283_s15 = inlined_call_operand.hbm [shape: f32[8,128], index: 15, kind: output, shape index: {0}]   ;;  %s2284_s16 = inlined_call_operand.hbm [shape: f32[8,128], index: 16, kind: output, shape index: {1}]  }
   0x1   :  { %2285 = sst [smem:[#allocation26_spill]] %s2268_s0 }
   0x2   :  { %22 = vsyncpa [#allocation3], 0 }
   0x3   :  { %23 = vsyncpa [#allocation6], 0 }
   0x4   :  { %24 = vsyncpa [#allocation9], 0 }
   0x5   :  { %25 = vsyncpa [#allocation12], 0 }
   0x6   :  { %26 = vsyncpa [#allocation15], 0 }
   0x7   :  { %27 = vsyncpa [#allocation4], 0 }
   0x8   :  { %28 = vsyncpa [#allocation18], 0  ;;  %s2050_s21 = smov [#allocation5]  }
   0x9   :  { %s44_s22 = sshll.u32 %s2050_s21, 4  ;;  %s45_s22 = int_to_ptr.vmem [resolvable:$true] %s44_s22 }
   0xa   :  { %s1844_s23 = scalar_lea.vmem %s45_s22, 2048  ;;  %p1849_p1 = scmp.lt.s32.totalorder %s45_s22, %s45_s22 }
   0xb   :  { %p1845_p0 = scmp.ne.s32.totalorder %s45_s22, %s1844_s23  ;;  %p1850_p2 = scmp.lt.s32.totalorder %s1844_s23, %s1844_s23 }
   0xd   :  { %p1851_p3 = por %p1850_p2, %p1849_p1 }
   0xf   :  { %p1852_p4 = pnand %p1851_p3, %p1845_p0 }
  0x11   :  { %1855 = shalt.err (!%p1852_p4)
}
  0x12   :  { %s2051_s24 = smov 128   ;;  %s2052_s25 = smov 8  }
  0x13   :  { %50 = dma.hbm_to_vmem [thread:$0]  %s2269_s1, 2048, %s45_s22, [#allocation6], %s2051_s24, %s2051_s24, %s2052_s25  }
  0x14   :  { %s2053_s28 = smov [#allocation8]  }
  0x15   :  { %s72_s29 = sshll.u32 %s2053_s28, 4  ;;  %s73_s29 = int_to_ptr.vmem [resolvable:$true] %s72_s29 }
  0x16   :  { %s1864_s30 = scalar_lea.vmem %s73_s29, 4096  ;;  %p1869_p6 = scmp.lt.s32.totalorder %s73_s29, %s73_s29 }
  0x17   :  { %p1865_p5 = scmp.ne.s32.totalorder %s73_s29, %s1864_s30  ;;  %p1870_p7 = scmp.lt.s32.totalorder %s1864_s30, %s1864_s30 }
  0x19   :  { %p1871_p8 = por %p1870_p7, %p1869_p6 }
  0x1b   :  { %p1872_p9 = pnand %p1871_p8, %p1865_p5 }
  0x1d   :  { %1875 = shalt.err (!%p1872_p9)
}
  0x1e   :  { %78 = dma.hbm_to_vmem [thread:$0]  %s2273_s5, 4096, %s73_s29, [#allocation9], %s2051_s24, %s2051_s24, %s2052_s25  }
  0x1f   :  { %s2054_s18 = smov [#allocation11]   ;;  %s2055_s1 = smov [#allocation2]  }
  0x20   :  { %s100_s19 = sshll.u32 %s2054_s18, 4  ;;  %s35_s20 = sshll.u32 %s2055_s1, 4  ;;  %s101_s19 = int_to_ptr.vmem [resolvable:$true] %s100_s19  ;;  %s36_s20 = int_to_ptr.vmem [resolvable:$true] %s35_s20 }
  0x21   :  { %s1884_s21 = scalar_lea.vmem %s101_s19, 1024  ;;  %p1889_p11 = scmp.lt.s32.totalorder %s101_s19, %s101_s19 }
  0x22   :  { %p1885_p10 = scmp.ne.s32.totalorder %s101_s19, %s1884_s21  ;;  %p1890_p12 = scmp.lt.s32.totalorder %s1884_s21, %s1884_s21 }
  0x24   :  { %p1891_p13 = por %p1890_p12, %p1889_p11 }
  0x26   :  { %p1892_p0 = pnand %p1891_p13, %p1885_p10 }
  0x28   :  { %1895 = shalt.err (!%p1892_p0)
}
  0x29   :  { %s2056_s22 = smov 64   ;;  %s2057_s23 = smov 4  }
  0x2a   :  { %106 = dma.hbm_to_vmem [thread:$0]  %s2277_s9, 1024, %s101_s19, [#allocation12], %s2056_s22, %s2056_s22, %s2057_s23  }
  0x2b   :  { %s1904_s27 = scalar_lea.vmem %s36_s20, 128  ;;  %p1909_p2 = scmp.lt.s32.totalorder %s36_s20, %s36_s20 }
  0x2c   :  { %p1905_p1 = scmp.ne.s32.totalorder %s36_s20, %s1904_s27  ;;  %p1910_p3 = scmp.lt.s32.totalorder %s1904_s27, %s1904_s27 }
  0x2e   :  { %p1911_p4 = por %p1910_p3, %p1909_p2 }
  0x30   :  { %p1912_p5 = pnand %p1911_p4, %p1905_p1 }
  0x32   :  { %1915 = shalt.err (!%p1912_p5)
}
  0x33   :  { %s2286_s30 = sld [smem:[#allocation26_spill]]  ;;  %s2058_s0 = smov [#allocation7]  }
  0x34   :  { %s58_s17 = sshll.u32 %s2058_s0, 4  ;;  %s2059_s18 = smov [#allocation10]   ;;  %s59_s17 = int_to_ptr.vmem [resolvable:$true] %s58_s17 }
  0x35   :  { %s86_s1 = sshll.u32 %s2059_s18, 4  ;;  %s1924_s21 = scalar_lea.vmem %s59_s17, 4096  ;;  %s87_s1 = int_to_ptr.vmem [resolvable:$true] %s86_s1 }
  0x36   :  { %p1925_p6 = scmp.ne.s32.totalorder %s59_s17, %s1924_s21  ;;  %p1929_p7 = scmp.lt.s32.totalorder %s59_s17, %s59_s17 }
  0x37   :  { %p1930_p8 = scmp.lt.s32.totalorder %s1924_s21, %s1924_s21 }
  0x39   :  { %38 = dma.hbm_to_vmem [thread:$0]  %s2286_s30, 128, %s36_s20, [#allocation3]  }
  0x3a   :  { %p1931_p9 = por %p1930_p8, %p1929_p7 }
  0x3c   :  { %p1932_p10 = pnand %p1931_p9, %p1925_p6 }
  0x3e   :  { %1935 = shalt.err (!%p1932_p10)
}
  0x3f   :  { %64 = dma.hbm_to_vmem [thread:$0]  %s2271_s3, 4096, %s59_s17, [#allocation6], %s2051_s24, %s2051_s24, %s2052_s25  }
  0x40   :  { %s1944_s20 = scalar_lea.vmem %s87_s1, 2048  ;;  %p1949_p12 = scmp.lt.s32.totalorder %s87_s1, %s87_s1 }
  0x41   :  { %p1945_p11 = scmp.ne.s32.totalorder %s87_s1, %s1944_s20  ;;  %p1950_p13 = scmp.lt.s32.totalorder %s1944_s20, %s1944_s20 }
  0x43   :  { %p1951_p0 = por %p1950_p13, %p1949_p12 }
  0x45   :  { %p1952_p1 = pnand %p1951_p0, %p1945_p11 }
  0x47   :  { %1955 = shalt.err (!%p1952_p1)
}
  0x48   :  { %92 = dma.hbm_to_vmem [thread:$0]  %s2275_s7, 2048, %s87_s1, [#allocation9], %s2056_s22, %s2056_s22, %s2057_s23  }
  0x49   :  { %s2060_s27 = smov [#allocation13]   ;;  %s2061_s29 = smov [#allocation14]  }
  0x4a   :  { %s114_s28 = sshll.u32 %s2060_s27, 4  ;;  %s128_s30 = sshll.u32 %s2061_s29, 4  ;;  %s115_s28 = int_to_ptr.vmem [resolvable:$true] %s114_s28  ;;  %s129_s30 = int_to_ptr.vmem [resolvable:$true] %s128_s30 }
  0x4b   :  { %s1964_s3 = scalar_lea.vmem %s115_s28, 1024  ;;  %p1969_p3 = scmp.lt.s32.totalorder %s115_s28, %s115_s28 }
  0x4c   :  { %p1965_p2 = scmp.ne.s32.totalorder %s115_s28, %s1964_s3  ;;  %p1970_p4 = scmp.lt.s32.totalorder %s1964_s3, %s1964_s3 }
  0x4e   :  { %p1971_p5 = por %p1970_p4, %p1969_p3 }
  0x50   :  { %p1972_p6 = pnand %p1971_p5, %p1965_p2 }
  0x52   :  { %1975 = shalt.err (!%p1972_p6)
}
  0x53   :  { %120 = dma.hbm_to_vmem [thread:$0]  %s2279_s11, 1024, %s115_s28, [#allocation12], %s2056_s22, %s2056_s22, %s2057_s23  }
  0x54   :  { %s1984_s7 = scalar_lea.vmem %s129_s30, 1024  ;;  %p1989_p8 = scmp.lt.s32.totalorder %s129_s30, %s129_s30 }
  0x55   :  { %p1985_p7 = scmp.ne.s32.totalorder %s129_s30, %s1984_s7  ;;  %p1990_p9 = scmp.lt.s32.totalorder %s1984_s7, %s1984_s7 }
  0x57   :  { %p1991_p10 = por %p1990_p9, %p1989_p8 }
  0x59   :  { %p1992_p11 = pnand %p1991_p10, %p1985_p7 }
  0x5b   :  { %1995 = shalt.err (!%p1992_p11)
}
  0x5c   :  { %134 = dma.hbm_to_vmem [thread:$0]  %s2281_s13, 1024, %s129_s30, [#allocation15], %s2056_s22, %s2056_s22, %s2057_s23  }
  0x5d   :  { %2036 = dma.done.wait [#allocation3], 128  }
  0x5e   :  { %2037 = vsyncadd [#allocation3], 4294967168 }
  0x5f   :  { %2038 = dma.done.wait [#allocation6], 6144  }
  0x60   :  { %2039 = vsyncadd [#allocation6], 4294961152 }
  0x61   :  { %2040 = dma.done.wait [#allocation9], 6144  }
  0x62   :  { %2041 = vsyncadd [#allocation9], 4294961152 }
  0x63   :  { %2042 = dma.done.wait [#allocation12], 2048  }
  0x64   :  { %2043 = vsyncadd [#allocation12], 4294965248 }
  0x65   :  { %2044 = dma.done.wait [#allocation15], 1024  }
  0x66   :  { %2045 = vsyncadd [#allocation15], 4294966272  ;;  %v2062_v0 = vmov 0   ;;  %v1660_v1 = vld [vmem:[#allocation5 + $0x74] ss:$8 sps:$4 sm:$0xff]   ;;  %vm2064_vm4 = vmmov 0  }
  0x67   :  { %304 = vmatprep.mubr.bf16.mxu0 %v2062_v0  ;;  %v1662_v2 = vld [vmem:[#allocation5 + $0x70] ss:$8 sps:$4 sm:$0xff]   ;;  %272 = vmatprep.subr.bf16.mxu0 %v1660_v1  ;;  %v1663_v3 = vld [vmem:[#allocation5 + $0x64] ss:$8 sps:$4 sm:$0xff]   ;;  %v1665_v4 = vld [vmem:[#allocation5 + $0x60] ss:$8 sps:$4 sm:$0xff]  }
  0x68   :  { %273 = vmatpush1.bf16.msra.mxu0 %v1662_v2  ;;  %v1666_v5 = vld [vmem:[#allocation5 + $0x54] ss:$8 sps:$4 sm:$0xff]   ;;  %v1668_v6 = vld [vmem:[#allocation5 + $0x50] ss:$8 sps:$4 sm:$0xff]   ;;  %v1669_v7 = vld [vmem:[#allocation5 + $0x44] ss:$8 sps:$4 sm:$0xff]  }
  0x69   :  { %274 = vmatprep.subr.bf16.mxu0 %v1663_v3  ;;  %v1671_v8 = vld [vmem:[#allocation5 + $0x40] ss:$8 sps:$4 sm:$0xff]   ;;  %v1672_v9 = vld [vmem:[#allocation5 + $0x34] ss:$8 sps:$4 sm:$0xff]   ;;  %v1686_v11 = vld [vmem:[#allocation7 + $0x70] ss:$8 sps:$4 sm:$0xff]  }
  0x6a   :  { %v1684_v10 = vld [vmem:[#allocation7 + $0x74] ss:$8 sps:$4 sm:$0xff]   ;;  %v1687_v12 = vld [vmem:[#allocation7 + $0x64] ss:$8 sps:$4 sm:$0xff]   ;;  %v1674_v13 = vld [vmem:[#allocation5 + $0x30] ss:$8 sps:$4 sm:$0xff]  }
  0x6b   :  { %531 = vmatprep.subr.bf16.mxu1 %v1684_v10  ;;  %v1689_v14 = vld [vmem:[#allocation7 + $0x60] ss:$8 sps:$4 sm:$0xff]   ;;  %v1690_v15 = vld [vmem:[#allocation7 + $0x54] ss:$8 sps:$4 sm:$0xff]   ;;  %v1675_v16 = vld [vmem:[#allocation5 + $0x24] ss:$8 sps:$4 sm:$0xff]  }
  0x6c   :  { %275 = vmatpush1.bf16.msra.mxu0 %v1665_v4  ;;  %532 = vmatpush1.bf16.msra.mxu1 %v1686_v11  ;;  %v1677_v17 = vld [vmem:[#allocation5 + $0x20] ss:$8 sps:$4 sm:$0xff]   ;;  %v1692_v18 = vld [vmem:[#allocation7 + $0x50] ss:$8 sps:$4 sm:$0xff]   ;;  %v1693_v19 = vld [vmem:[#allocation7 + $0x44] ss:$8 sps:$4 sm:$0xff]  }
  0x6d   :  { %276 = vmatprep.subr.bf16.mxu0 %v1666_v5  ;;  %533 = vmatprep.subr.bf16.mxu1 %v1687_v12  ;;  %v1678_v20 = vld [vmem:[#allocation5 + $0x14] ss:$8 sps:$4 sm:$0xff]   ;;  %v1680_v21 = vld [vmem:[#allocation5 + $0x10] ss:$8 sps:$4 sm:$0xff]   ;;  %v1681_v22 = vld [vmem:[#allocation5 + $0x4] ss:$8 sps:$4 sm:$0xff]   ;;  %v182_v5 = vlaneseq }
  0x6e   :  { %v1695_v23 = vld [vmem:[#allocation7 + $0x40] ss:$8 sps:$4 sm:$0xff]   ;;  %v1696_v24 = vld [vmem:[#allocation7 + $0x34] ss:$8 sps:$4 sm:$0xff]   ;;  %v1698_v25 = vld [vmem:[#allocation7 + $0x30] ss:$8 sps:$4 sm:$0xff]  }
  0x6f   :  { %v1683_v26 = vld [vmem:[#allocation5] ss:$8 sps:$4 sm:$0xff]   ;;  %v162_v27 = vld [vmem:[#allocation2] sm:$0xff]  ;;  %v1699_v28 = vld [vmem:[#allocation7 + $0x24] ss:$8 sps:$4 sm:$0xff]  }
  0x70   :  { %277 = vmatpush1.bf16.msra.mxu0 %v1668_v6  ;;  %534 = vmatpush1.bf16.msra.mxu1 %v1689_v14  ;;  %v1701_v29 = vld [vmem:[#allocation7 + $0x20] ss:$8 sps:$4 sm:$0xff]   ;;  %v1702_v30 = vld [vmem:[#allocation7 + $0x14] ss:$8 sps:$4 sm:$0xff]   ;;  %v2197_v31 = vpack.c.bf16 %v162_v27, %v162_v27  ;;  %v1704_v32 = vld [vmem:[#allocation7 + $0x10] ss:$8 sps:$4 sm:$0xff]  }
  0x71   :  { %278 = vmatprep.subr.bf16.mxu0 %v1669_v7  ;;  %535 = vmatprep.subr.bf16.mxu1 %v1690_v15  ;;  %v1705_v33 = vld [vmem:[#allocation7 + $0x4] ss:$8 sps:$4 sm:$0xff]   ;;  %v1707_v34 = vld [vmem:[#allocation7] ss:$8 sps:$4 sm:$0xff]   ;;  %v1708_v35 = vld [vmem:[#allocation7 + $0xf4] ss:$8 sps:$4 sm:$0xff]  }
  0x72   :  { %v1710_v36 = vld [vmem:[#allocation7 + $0xf0] ss:$8 sps:$4 sm:$0xff]   ;;  %v1711_v37 = vld [vmem:[#allocation7 + $0xe4] ss:$8 sps:$4 sm:$0xff]   ;;  %v1713_v38 = vld [vmem:[#allocation7 + $0xe0] ss:$8 sps:$4 sm:$0xff]  }
  0x73   :  { %v1714_v39 = vld [vmem:[#allocation7 + $0xd4] ss:$8 sps:$4 sm:$0xff]   ;;  %v1716_v40 = vld [vmem:[#allocation7 + $0xd0] ss:$8 sps:$4 sm:$0xff]   ;;  %v1717_v41 = vld [vmem:[#allocation7 + $0xc4] ss:$8 sps:$4 sm:$0xff]  }
  0x74   :  { %279 = vmatpush1.bf16.msra.mxu0 %v1671_v8  ;;  %536 = vmatpush1.bf16.msra.mxu1 %v1692_v18  ;;  %v1719_v42 = vld [vmem:[#allocation7 + $0xc0] ss:$8 sps:$4 sm:$0xff]   ;;  %v1720_v43 = vld [vmem:[#allocation7 + $0xb4] ss:$8 sps:$4 sm:$0xff]   ;;  %v1722_v44 = vld [vmem:[#allocation7 + $0xb0] ss:$8 sps:$4 sm:$0xff]  }
  0x75   :  { %280 = vmatprep.subr.bf16.mxu0 %v1672_v9  ;;  %537 = vmatprep.subr.bf16.mxu1 %v1693_v19  ;;  %v1723_v45 = vld [vmem:[#allocation7 + $0xa4] ss:$8 sps:$4 sm:$0xff]   ;;  %v1725_v46 = vld [vmem:[#allocation7 + $0xa0] ss:$8 sps:$4 sm:$0xff]   ;;  %v1726_v47 = vld [vmem:[#allocation7 + $0x94] ss:$8 sps:$4 sm:$0xff]  }
  0x76   :  { %v1728_v48 = vld [vmem:[#allocation7 + $0x90] ss:$8 sps:$4 sm:$0xff]   ;;  %v1729_v49 = vld [vmem:[#allocation7 + $0x84] ss:$8 sps:$4 sm:$0xff]   ;;  %v1731_v50 = vld [vmem:[#allocation7 + $0x80] ss:$8 sps:$4 sm:$0xff]  }
  0x77   :  { %v1732_v51 = vld [vmem:[#allocation8 + $0x70] ss:$8 sps:$4 sm:$0xff]   ;;  %v1734_v52 = vld [vmem:[#allocation8 + $0x74] ss:$8 sps:$4 sm:$0xff]   ;;  %v1737_v53 = vld [vmem:[#allocation8 + $0x64] ss:$8 sps:$4 sm:$0xff]  }
  0x78   :  { %281 = vmatpush1.bf16.msra.mxu0 %v1674_v13  ;;  %538 = vmatpush1.bf16.msra.mxu1 %v1695_v23  ;;  %v1735_v54 = vld [vmem:[#allocation8 + $0x60] ss:$8 sps:$4 sm:$0xff]   ;;  %v1740_v55 = vld [vmem:[#allocation8 + $0x54] ss:$8 sps:$4 sm:$0xff]   ;;  %v1738_v56 = vld [vmem:[#allocation8 + $0x50] ss:$8 sps:$4 sm:$0xff]  }
  0x79   :  { %282 = vmatprep.subr.bf16.mxu0 %v1675_v16  ;;  %539 = vmatprep.subr.bf16.mxu1 %v1696_v24  ;;  %v1743_v57 = vld [vmem:[#allocation8 + $0x44] ss:$8 sps:$4 sm:$0xff]   ;;  %v1741_v58 = vld [vmem:[#allocation8 + $0x40] ss:$8 sps:$4 sm:$0xff]   ;;  %v1746_v59 = vld [vmem:[#allocation8 + $0x34] ss:$8 sps:$4 sm:$0xff]  }
  0x7a   :  { %v1744_v60 = vld [vmem:[#allocation8 + $0x30] ss:$8 sps:$4 sm:$0xff]   ;;  %v1749_v61 = vld [vmem:[#allocation8 + $0x24] ss:$8 sps:$4 sm:$0xff]   ;;  %v1747_v62 = vld [vmem:[#allocation8 + $0x20] ss:$8 sps:$4 sm:$0xff]  }
  0x7b   :  { %v1752_v63 = vld [vmem:[#allocation8 + $0x14] ss:$8 sps:$4 sm:$0xff]   ;;  %v1750_v0 = vld [vmem:[#allocation8 + $0x10] ss:$8 sps:$4 sm:$0xff]   ;;  %v1755_v1 = vld [vmem:[#allocation8 + $0x4] ss:$8 sps:$4 sm:$0xff]  }
  0x7c   :  { %283 = vmatpush1.bf16.msra.mxu0 %v1677_v17  ;;  %540 = vmatpush1.bf16.msra.mxu1 %v1698_v25  ;;  %v1753_v2 = vld [vmem:[#allocation8] ss:$8 sps:$4 sm:$0xff]   ;;  %v1758_v3 = vld [vmem:[#allocation8 + $0xf4] ss:$8 sps:$4 sm:$0xff]   ;;  %v1756_v4 = vld [vmem:[#allocation8 + $0xf0] ss:$8 sps:$4 sm:$0xff]  }
  0x7d   :  { %284 = vmatprep.subr.bf16.mxu0 %v1678_v20  ;;  %541 = vmatprep.subr.bf16.mxu1 %v1699_v28  ;;  %v183_v6 = vshrl.u32 %v182_v5, 7  ;;  %v180_v8 = vld [vmem:[%s2270_s2] sm:$0x3] }
  0x7f   :  { %v2200_v7 = vsub.s32 0, %v183_v6  ;;  %v2205_v9 = vsub.s32 1, %v183_v6  ;;  %v1781_v6 = vld [vmem:[#allocation11 + $0x30] sm:$0xff]  }
  0x80   :  { %285 = vmatpush1.bf16.msra.mxu0 %v1680_v21  ;;  %542 = vmatpush1.bf16.msra.mxu1 %v1701_v29 }
  0x81   :  { %286 = vmatprep.subr.bf16.mxu0 %v1681_v22  ;;  %543 = vmatprep.subr.bf16.mxu1 %v1702_v30  ;;  %v185_v10 = vrot.slane %v180_v8, %v2200_v7  ;;  %v189_v11 = vrot.slane %v180_v8, %v2205_v9  ;;  %v1761_v30 = vld [vmem:[#allocation8 + $0xe4] ss:$8 sps:$4 sm:$0xff]  }
  0x82   :  { %v1782_v8 = vld [vmem:[#allocation11 + $0x28] sm:$0xff]  }
  0x84   :  { %287 = vmatpush1.bf16.msra.mxu0 %v1683_v26  ;;  %544 = vmatpush1.bf16.msra.mxu1 %v1704_v32  ;;  %v1759_v32 = vld [vmem:[#allocation8 + $0xe0] ss:$8 sps:$4 sm:$0xff]  }
  0x85   :  { %545 = vmatprep.subr.bf16.mxu1 %v1705_v33  ;;  %790 = vmatprep.subr.bf16.mxu0 %v1734_v52  ;;  %v1764_v33 = vld [vmem:[#allocation8 + $0xd4] ss:$8 sps:$4 sm:$0xff]  }
  0x87   :  { %305 = vmatmul.mubr.bf16.vlgmr.msra.gmra.mxu0 %v2197_v31 }
  0x88   :  { %546 = vmatpush1.bf16.msra.mxu1 %v1707_v34  ;;  %791 = vmatpush1.bf16.msra.mxu0 %v1732_v51  ;;  %v1762_v34 = vld [vmem:[#allocation8 + $0xd0] ss:$8 sps:$4 sm:$0xff]  }
  0x89   :  { %547 = vmatprep.subr.bf16.mxu1 %v1708_v35  ;;  %792 = vmatprep.subr.bf16.mxu0 %v1737_v53  ;;  %v1767_v35 = vld [vmem:[#allocation8 + $0xc4] ss:$8 sps:$4 sm:$0xff]  }
  0x8c   :  { %548 = vmatpush2.bf16.msra.mxu1 %v1710_v36  ;;  %793 = vmatpush1.bf16.msra.mxu0 %v1735_v54  ;;  %v1765_v36 = vld [vmem:[#allocation8 + $0xc0] ss:$8 sps:$4 sm:$0xff]  }
  0x8d   :  { %549 = vmatprep.subr.bf16.mxu1 %v1711_v37  ;;  %794 = vmatprep.subr.bf16.mxu0 %v1740_v55  ;;  %v1770_v37 = vld [vmem:[#allocation8 + $0xb4] ss:$8 sps:$4 sm:$0xff]  }
  0x90   :  { %550 = vmatpush2.bf16.msra.mxu1 %v1713_v38  ;;  %795 = vmatpush1.bf16.msra.mxu0 %v1738_v56  ;;  %v1768_v38 = vld [vmem:[#allocation8 + $0xb0] ss:$8 sps:$4 sm:$0xff]  }
  0x91   :  { %551 = vmatprep.subr.bf16.mxu1 %v1714_v39  ;;  %796 = vmatprep.subr.bf16.mxu0 %v1743_v57  ;;  %v1773_v39 = vld [vmem:[#allocation8 + $0xa4] ss:$8 sps:$4 sm:$0xff]  }
  0x94   :  { %552 = vmatpush2.bf16.msra.mxu1 %v1716_v40  ;;  %797 = vmatpush1.bf16.msra.mxu0 %v1741_v58  ;;  %v1771_v40 = vld [vmem:[#allocation8 + $0xa0] ss:$8 sps:$4 sm:$0xff]  }
  0x95   :  { %553 = vmatprep.subr.bf16.mxu1 %v1717_v41  ;;  %798 = vmatprep.subr.bf16.mxu0 %v1746_v59  ;;  %v1776_v41 = vld [vmem:[#allocation8 + $0x94] ss:$8 sps:$4 sm:$0xff]  }
  0x98   :  { %554 = vmatpush2.bf16.msra.mxu1 %v1719_v42  ;;  %799 = vmatpush1.bf16.msra.mxu0 %v1744_v60  ;;  %v1774_v42 = vld [vmem:[#allocation8 + $0x90] ss:$8 sps:$4 sm:$0xff]  }
  0x99   :  { %555 = vmatprep.subr.bf16.mxu1 %v1720_v43  ;;  %800 = vmatprep.subr.bf16.mxu0 %v1749_v61  ;;  %v1779_v43 = vld [vmem:[#allocation8 + $0x84] ss:$8 sps:$4 sm:$0xff]  }
  0x9c   :  { %556 = vmatpush2.bf16.msra.mxu1 %v1722_v44  ;;  %801 = vmatpush1.bf16.msra.mxu0 %v1747_v62  ;;  %v1777_v44 = vld [vmem:[#allocation8 + $0x80] ss:$8 sps:$4 sm:$0xff]  }
  0x9d   :  { %557 = vmatprep.subr.bf16.mxu1 %v1723_v45  ;;  %802 = vmatprep.subr.bf16.mxu0 %v1752_v63  ;;  %v2063_v45 = vmov 0.0  }
  0xa0   :  { %558 = vmatpush2.bf16.msra.mxu1 %v1725_v46  ;;  %803 = vmatpush1.bf16.msra.mxu0 %v1750_v0  ;;  %v1788_v46 = vld [vmem:[#allocation10 + $0x78] sm:$0xff]  }
  0xa1   :  { %559 = vmatprep.subr.bf16.mxu1 %v1726_v47  ;;  %804 = vmatprep.subr.bf16.mxu0 %v1755_v1  ;;  %v1789_v47 = vld [vmem:[#allocation10 + $0x38] sm:$0xff]  }
  0xa4   :  { %560 = vmatpush2.bf16.msra.mxu1 %v1728_v48  ;;  %805 = vmatpush1.bf16.msra.mxu0 %v1753_v2  ;;  %v359_v48 = vld [vmem:[%s2272_s4] sm:$0x3] }
  0xa5   :  { %561 = vmatprep.subr.bf16.mxu1 %v1729_v49  ;;  %806 = vmatprep.subr.bf16.mxu0 %v1758_v3  ;;  %v364_v49 = vrot.slane %v359_v48, %v2200_v7 }
  0xa8   :  { %562 = vmatpush2.bf16.msra.mxu1 %v1731_v50  ;;  %807 = vmatpush2.bf16.msra.mxu0 %v1756_v4  ;;  %v368_v50 = vrot.slane %v359_v48, %v2205_v9  ;;  %v1780_v4 = vld [vmem:[#allocation11 + $0x38] sm:$0xff]  }
  0xa9   :  { %808 = vmatprep.subr.bf16.mxu0 %v1761_v30  ;;  %1534 = vmatprep.subr.bf16.mxu1 %v1788_v46  ;;  %v1804_v48 = vld [vmem:[#allocation13 + $0x38] sm:$0xff]  }
  0xac   :  { %809 = vmatpush2.bf16.msra.mxu0 %v1759_v32 }
  0xad   :  { %810 = vmatprep.subr.bf16.mxu0 %v1764_v33 }
  0xb0   :  { %811 = vmatpush2.bf16.msra.mxu0 %v1762_v34 }
  0xb1   :  { %812 = vmatprep.subr.bf16.mxu0 %v1767_v35 }
  0xb4   :  { %813 = vmatpush2.bf16.msra.mxu0 %v1765_v36 }
  0xb5   :  { %814 = vmatprep.subr.bf16.mxu0 %v1770_v37 }
  0xb8   :  { %815 = vmatpush2.bf16.msra.mxu0 %v1768_v38 }
  0xb9   :  { %816 = vmatprep.subr.bf16.mxu0 %v1773_v39 }
  0xbc   :  { %817 = vmatpush2.bf16.msra.mxu0 %v1771_v40 }
  0xbd   :  { %818 = vmatprep.subr.bf16.mxu0 %v1776_v41 }
  0xc0   :  { %819 = vmatpush2.bf16.msra.mxu0 %v1774_v42 }
  0xc1   :  { %820 = vmatprep.subr.bf16.mxu0 %v1779_v43 }
  0xc4   :  { %821 = vmatpush2.bf16.msra.mxu0 %v1777_v44 }
  0xc5   :  { %1583 = vmatprep.subr.bf16.mxu0 %v2063_v45 }
 0x147   :  { %v306_v12 = vpop.f32.mrf.mxu0 }
 0x148   :  { %v307_v13 = vadd.f32 %v306_v12, %v185_v10  ;;  %v1783_v10 = vld [vmem:[#allocation11 + $0x20] sm:$0xff]   ;;  %v1785_v12 = vld [vmem:[#allocation11 + $0x10] sm:$0xff]  }
 0x149   :  { %v308_v14 = vpop.f32.mrf.mxu0 }
 0x14a   :  { %v315_v15 = vmin.f32 %v307_v13, 0.0  ;;  %v309_v16 = vadd.f32 %v308_v14, %v189_v11  ;;  %vm313_vm0 = vcmp.gt.f32.partialorder %v307_v13, 0.0  ;;  %v1784_v11 = vld [vmem:[#allocation11 + $0x18] sm:$0xff]   ;;  %v1787_v14 = vld [vmem:[#allocation11] sm:$0xff]  }
 0x14b   :  { %v310_v17 = vpop.f32.mrf.mxu0 }
 0x14c   :  { %v317_v18 = vmul.f32 1.442695, %v315_v15  ;;  %v316_v19 = vmin.f32 %v309_v16, 0.0  ;;  %vm314_vm1 = vcmp.gt.f32.partialorder %v309_v16, 0.0  ;;  %v1790_v15 = vld [vmem:[#allocation10 + $0x70] sm:$0xff]   ;;  %v1792_v17 = vld [vmem:[#allocation10 + $0x68] sm:$0xff]  }
 0x14d   :  { %v311_v20 = vpop.f32.mrf.mxu0 }
 0x14e   :  { %1820 = vpow2.f32 %v317_v18  ;;  %v319_v21 = vmul.f32 1.442695, %v316_v19  ;;  %v1793_v18 = vld [vmem:[#allocation10 + $0x28] sm:$0xff]   ;;  %v1794_v19 = vld [vmem:[#allocation10 + $0x60] sm:$0xff]  }
 0x14f   :  { %v1795_v20 = vld [vmem:[#allocation10 + $0x20] sm:$0xff]  }
 0x150   :  { %1822 = vpow2.f32 %v319_v21  ;;  %v1796_v21 = vld [vmem:[#allocation10 + $0x58] sm:$0xff]  }
 0x15b   :  { %v1821_v22 = vpop.eup %1820 }
 0x15c   :  { %v1418_v23 = vadd.f32 -1.0, %v1821_v22  ;;  %v1797_v22 = vld [vmem:[#allocation10 + $0x18] sm:$0xff]  }
 0x15d   :  { %v1823_v24 = vpop.eup %1822 }
 0x15e   :  { %v1419_v25 = vadd.f32 -1.0, %v1823_v24  ;;  %v323_v26 = vsel %vm313_vm0, %v307_v13, %v1418_v23  ;;  %v1786_v13 = vld [vmem:[#allocation11 + $0x8] sm:$0xff]   ;;  %v1799_v23 = vld [vmem:[#allocation10 + $0x10] sm:$0xff]  }
 0x15f   :  { %v325_v29 = vpack.c.bf16 %v323_v26, %v323_v26  ;;  %v1800_v24 = vld [vmem:[#allocation10 + $0x48] sm:$0xff]   ;;  %v1802_v26 = vld [vmem:[#allocation10 + $0x40] sm:$0xff]  }
 0x160   :  { %v324_v27 = vsel %vm314_vm1, %v309_v16, %v1419_v25  ;;  %v1791_v16 = vld [vmem:[#allocation10 + $0x30] sm:$0xff]   ;;  %v1801_v25 = vld [vmem:[#allocation10 + $0x8] sm:$0xff]  }
 0x161   :  { %v326_v28 = vpack.c.bf16 %v324_v27, %v324_v27  ;;  %v1803_v27 = vld [vmem:[#allocation10] sm:$0xff]  }
 0x163   :  { %563 = vmatprep.mubr.bf16.mxu1 %v326_v28  ;;  %v618_v28 = vld [vmem:[%s2274_s6] sm:$0x3] }
 0x164   :  { %564 = vmatmul.mubr.bf16.vlgmr.msra.gmra.mxu1 %v325_v29  ;;  %v623_v29 = vrot.slane %v618_v28, %v2200_v7  ;;  %v627_v30 = vrot.slane %v618_v28, %v2205_v9 }
 0x165   :  { %1535 = vmatpush3.bf16.msra.mxu1 %v1789_v47 }
 0x166   :  { %1536 = vmatprep.subr.bf16.mxu1 %v1790_v15 }
 0x169   :  { %1537 = vmatpush3.bf16.msra.mxu1 %v1791_v16  ;;  %v1488_v16 = vld [vmem:[%s2276_s8] ss:$0 sm:$0xff]  ;;  %s2065_s8 = smov [#allocation16]  }
 0x16a   :  { %1538 = vmatprep.subr.bf16.mxu1 %v1792_v17  ;;  %s1375_s19 = sshll.u32 %s2065_s8, 4  ;;  %s1376_s19 = int_to_ptr.vmem [resolvable:$true] %s1375_s19 }
 0x16b   :  { %s1996_s20 = scalar_lea.vmem %s1376_s19, 128  ;;  %p2001_p13 = scmp.lt.s32.totalorder %s1376_s19, %s1376_s19 }
 0x16c   :  { %p1997_p12 = scmp.ne.s32.totalorder %s1376_s19, %s1996_s20  ;;  %p2002_p0 = scmp.lt.s32.totalorder %s1996_s20, %s1996_s20 }
 0x16d   :  { %1539 = vmatpush3.bf16.msra.mxu1 %v1793_v18 }
 0x16e   :  { %1540 = vmatprep.subr.bf16.mxu1 %v1794_v19  ;;  %p2003_p1 = por %p2002_p0, %p2001_p13 }
 0x170   :  { %p2004_p2 = pnand %p2003_p1, %p1997_p12 }
 0x171   :  { %1541 = vmatpush3.bf16.msra.mxu1 %v1795_v20 }
 0x172   :  { %1542 = vmatprep.subr.bf16.mxu1 %v1796_v21 }
 0x175   :  { %1543 = vmatpush3.bf16.msra.mxu1 %v1797_v22  ;;  %v1515_v22 = vld [vmem:[%s2280_s12] ss:$0 sm:$0xff] }
 0x224   :  { %v565_v51 = vpop.f32.mrf.mxu1 }
 0x225   :  { %v566_v52 = vadd.f32 %v565_v51, %v364_v49  ;;  %v1805_v51 = vld [vmem:[#allocation13 + $0x30] sm:$0xff]  }
 0x226   :  { %v567_v53 = vpop.f32.mrf.mxu1 }
 0x227   :  { %v574_v54 = vmin.f32 %v566_v52, 0.0  ;;  %v568_v55 = vadd.f32 %v567_v53, %v368_v50  ;;  %vm572_vm2 = vcmp.gt.f32.partialorder %v566_v52, 0.0  ;;  %v1505_v50 = vld [vmem:[%s2278_s10] ss:$0 sm:$0xff] }
 0x228   :  { %v569_v56 = vpop.f32.mrf.mxu1 }
 0x229   :  { %v576_v57 = vmul.f32 1.442695, %v574_v54  ;;  %v575_v58 = vmin.f32 %v568_v55, 0.0  ;;  %vm573_vm3 = vcmp.gt.f32.partialorder %v568_v55, 0.0 }
 0x22a   :  { %v570_v59 = vpop.f32.mrf.mxu1 }
 0x22b   :  { %1824 = vpow2.f32 %v576_v57  ;;  %v578_v60 = vmul.f32 1.442695, %v575_v58 }
 0x22d   :  { %1826 = vpow2.f32 %v578_v60  ;;  %v1807_v60 = vld [vmem:[#allocation13 + $0x20] sm:$0xff]  }
 0x238   :  { %v1825_v61 = vpop.eup %1824 }
 0x239   :  { %v1452_v62 = vadd.f32 -1.0, %v1825_v61  ;;  %v1808_v61 = vld [vmem:[#allocation13 + $0x18] sm:$0xff]  }
 0x23a   :  { %v1827_v63 = vpop.eup %1826 }
 0x23b   :  { %v1453_v0 = vadd.f32 -1.0, %v1827_v63  ;;  %v582_v1 = vsel %vm572_vm2, %v566_v52, %v1452_v62  ;;  %v1809_v62 = vld [vmem:[#allocation13 + $0x10] sm:$0xff]   ;;  %v1810_v63 = vld [vmem:[#allocation13 + $0x8] sm:$0xff]  }
 0x23c   :  { %v584_v5 = vpack.c.bf16 %v582_v1, %v582_v1 }
 0x23d   :  { %v583_v2 = vsel %vm573_vm3, %v568_v55, %v1453_v0  ;;  %v1806_v55 = vld [vmem:[#allocation13 + $0x28] sm:$0xff]  }
 0x23e   :  { %v585_v3 = vpack.c.bf16 %v583_v2, %v583_v2  ;;  %v1811_v2 = vld [vmem:[#allocation13] sm:$0xff]  }
 0x240   :  { %822 = vmatprep.mubr.bf16.mxu0 %v585_v3 }
 0x241   :  { %823 = vmatmul.mubr.bf16.vlgmr.msra.gmra.mxu0 %v584_v5  ;;  %v1812_v5 = vld [vmem:[#allocation14 + $0x38] sm:$0xff]  }
 0x242   :  { %1584 = vmatpush3.bf16.msra.mxu0 %v1780_v4  ;;  %1599 = vmatprep.mubr.msk.bf16.mxu0 %vm2064_vm4, %v2063_v45 }
 0x243   :  { %1585 = vmatprep.subr.bf16.mxu0 %v2063_v45 }
 0x246   :  { %1586 = vmatpush3.bf16.msra.mxu0 %v1781_v6  ;;  %v1813_v6 = vld [vmem:[#allocation14 + $0x30] sm:$0xff]  }
 0x247   :  { %1587 = vmatprep.subr.bf16.mxu0 %v2063_v45 }
 0x24a   :  { %1588 = vmatpush3.bf16.msra.mxu0 %v1782_v8  ;;  %v1814_v8 = vld [vmem:[#allocation14 + $0x28] sm:$0xff]  }
 0x24b   :  { %1589 = vmatprep.subr.bf16.mxu0 %v2063_v45 }
 0x24e   :  { %1590 = vmatpush3.bf16.msra.mxu0 %v1783_v10  ;;  %v1815_v10 = vld [vmem:[#allocation14 + $0x20] sm:$0xff]  }
 0x24f   :  { %1591 = vmatprep.subr.bf16.mxu0 %v2063_v45 }
 0x252   :  { %1592 = vmatpush3.bf16.msra.mxu0 %v1784_v11  ;;  %v1816_v11 = vld [vmem:[#allocation14 + $0x18] sm:$0xff]  }
 0x253   :  { %1593 = vmatprep.subr.bf16.mxu0 %v2063_v45 }
 0x256   :  { %1594 = vmatpush3.bf16.msra.mxu0 %v1785_v12  ;;  %v1817_v12 = vld [vmem:[#allocation14 + $0x10] sm:$0xff]  }
 0x257   :  { %1595 = vmatprep.subr.bf16.mxu0 %v2063_v45 }
 0x25a   :  { %1596 = vmatpush3.bf16.msra.mxu0 %v1786_v13  ;;  %v1818_v13 = vld [vmem:[#allocation14 + $0x8] sm:$0xff]  }
 0x25b   :  { %1597 = vmatprep.subr.bf16.mxu0 %v2063_v45 }
 0x25e   :  { %1598 = vmatpush3.bf16.msra.mxu0 %v1787_v14  ;;  %v1819_v14 = vld [vmem:[#allocation14] sm:$0xff]  }
 0x25f   :  { %1623 = vmatprep.subr.bf16.mxu0 %v2063_v45 }
 0x261   :  { %1600 = vmatmul.mubr.bf16.vlgmr.msra.gmra.mxu0 %v2197_v31  ;;  %v1798_v31 = vld [vmem:[#allocation10 + $0x50] sm:$0xff]  }
 0x262   :  { %1639 = vmatprep.mubr.msk.bf16.mxu0 %vm2064_vm4, %v2063_v45  ;;  %1544 = vmatprep.subr.bf16.mxu1 %v1798_v31 }
 0x263   :  { %1545 = vmatpush3.bf16.msra.mxu1 %v1799_v23  ;;  %1624 = vmatpush3.bf16.msra.mxu0 %v1812_v5 }
 0x264   :  { %1546 = vmatprep.subr.bf16.mxu1 %v1800_v24  ;;  %1625 = vmatprep.subr.bf16.mxu0 %v2063_v45 }
 0x267   :  { %1547 = vmatpush3.bf16.msra.mxu1 %v1801_v25  ;;  %1626 = vmatpush3.bf16.msra.mxu0 %v1813_v6 }
 0x268   :  { %1548 = vmatprep.subr.bf16.mxu1 %v1802_v26  ;;  %1627 = vmatprep.subr.bf16.mxu0 %v2063_v45 }
 0x26b   :  { %1549 = vmatpush3.bf16.msra.mxu1 %v1803_v27  ;;  %1628 = vmatpush3.bf16.msra.mxu0 %v1814_v8 }
 0x26c   :  { %1603 = vmatprep.subr.bf16.mxu1 %v2063_v45  ;;  %1629 = vmatprep.subr.bf16.mxu0 %v2063_v45 }
 0x26f   :  { %1630 = vmatpush3.bf16.msra.mxu0 %v1815_v10 }
 0x270   :  { %1631 = vmatprep.subr.bf16.mxu0 %v2063_v45 }
 0x273   :  { %1632 = vmatpush3.bf16.msra.mxu0 %v1816_v11 }
 0x274   :  { %1633 = vmatprep.subr.bf16.mxu0 %v2063_v45 }
 0x277   :  { %1634 = vmatpush3.bf16.msra.mxu0 %v1817_v12 }
 0x278   :  { %1635 = vmatprep.subr.bf16.mxu0 %v2063_v45 }
 0x27b   :  { %1636 = vmatpush3.bf16.msra.mxu0 %v1818_v13 }
 0x27c   :  { %1637 = vmatprep.subr.bf16.mxu0 %v2063_v45 }
 0x27f   :  { %1638 = vmatpush3.bf16.msra.mxu0 %v1819_v14 }
 0x301   :  { %v824_v32 = vpop.f32.mrf.mxu0 }
 0x302   :  { %v825_v33 = vadd.f32 %v824_v32, %v623_v29 }
 0x303   :  { %v826_v34 = vpop.f32.mrf.mxu0 }
 0x304   :  { %v833_v35 = vmin.f32 %v825_v33, 0.0  ;;  %v827_v36 = vadd.f32 %v826_v34, %v627_v30  ;;  %vm831_vm5 = vcmp.gt.f32.partialorder %v825_v33, 0.0 }
 0x305   :  { %v828_v37 = vpop.f32.mrf.mxu0 }
 0x306   :  { %v835_v38 = vmul.f32 1.442695, %v833_v35  ;;  %v834_v39 = vmin.f32 %v827_v36, 0.0  ;;  %vm832_vm6 = vcmp.gt.f32.partialorder %v827_v36, 0.0 }
 0x307   :  { %v829_v40 = vpop.f32.mrf.mxu0 }
 0x308   :  { %1828 = vpow2.f32 %v835_v38  ;;  %v837_v41 = vmul.f32 1.442695, %v834_v39 }
 0x30a   :  { %1830 = vpow2.f32 %v837_v41 }
 0x315   :  { %v1829_v42 = vpop.eup %1828 }
 0x316   :  { %v1486_v43 = vadd.f32 -1.0, %v1829_v42 }
 0x317   :  { %v1831_v44 = vpop.eup %1830 }
 0x318   :  { %v1487_v46 = vadd.f32 -1.0, %v1831_v44  ;;  %v841_v7 = vsel %vm831_vm5, %v825_v33, %v1486_v43 }
 0x319   :  { %v843_v49 = vpack.c.bf16 %v841_v7, %v841_v7 }
 0x31a   :  { %v842_v9 = vsel %vm832_vm6, %v827_v36, %v1487_v46 }
 0x31b   :  { %v844_v47 = vpack.c.bf16 %v842_v9, %v842_v9 }
 0x31d   :  { %1012 = vmatprep.mubr.bf16.mxu1 %v844_v47 }
 0x31e   :  { %1013 = vmatmul.mubr.bf16.vlgmr.msra.gmra.mxu1 %v843_v49 }
 0x31f   :  { %1604 = vmatpush3.bf16.msra.mxu1 %v1804_v48  ;;  %1619 = vmatprep.mubr.msk.bf16.mxu1 %vm2064_vm4, %v2063_v45 }
 0x320   :  { %1605 = vmatprep.subr.bf16.mxu1 %v2063_v45 }
 0x321   :  { %v1126_v52 = vpop.f32.mrf.mxu0 }
 0x322   :  { %v1127_v53 = vadd.f32 %v1505_v50, %v1126_v52 }
 0x323   :  { %v1601_v54 = vpop.f32.mrf.mxu0  ;;  %1606 = vmatpush3.bf16.msra.mxu1 %v1805_v51 }
 0x324   :  { %v1133_v56 = vmin.f32 %v1127_v53, 0.0  ;;  %1607 = vmatprep.subr.bf16.mxu1 %v2063_v45  ;;  %vm1132_vm7 = vcmp.gt.f32.partialorder %v1127_v53, 0.0 }
 0x325   :  { %v1129_v57 = vpop.f32.mrf.mxu0 }
 0x326   :  { %v1134_v58 = vmul.f32 1.442695, %v1133_v56 }
 0x327   :  { %v1602_v59 = vpop.f32.mrf.mxu0  ;;  %1608 = vmatpush3.bf16.msra.mxu1 %v1806_v55 }
 0x328   :  { %1832 = vpow2.f32 %v1134_v58  ;;  %1609 = vmatprep.subr.bf16.mxu1 %v2063_v45 }
 0x32b   :  { %1610 = vmatpush3.bf16.msra.mxu1 %v1807_v60 }
 0x32c   :  { %1611 = vmatprep.subr.bf16.mxu1 %v2063_v45 }
 0x32f   :  { %1612 = vmatpush3.bf16.msra.mxu1 %v1808_v61 }
 0x330   :  { %1613 = vmatprep.subr.bf16.mxu1 %v2063_v45 }
 0x333   :  { %1614 = vmatpush3.bf16.msra.mxu1 %v1809_v62 }
 0x334   :  { %1615 = vmatprep.subr.bf16.mxu1 %v2063_v45 }
 0x335   :  { %v1833_v0 = vpop.eup %1832 }
 0x336   :  { %v1514_v1 = vadd.f32 -1.0, %v1833_v0 }
 0x337   :  { %1616 = vmatpush3.bf16.msra.mxu1 %v1810_v63 }
 0x338   :  { %1617 = vmatprep.subr.bf16.mxu1 %v2063_v45  ;;  %v1137_v3 = vsel %vm1132_vm7, %v1127_v53, %v1514_v1 }
 0x339   :  { %v1138_v4 = vpack.c.bf16 %v1137_v3, %v1137_v3 }
 0x33b   :  { %1618 = vmatpush3.bf16.msra.mxu1 %v1811_v2 }
 0x33e   :  { %1620 = vmatmul.mubr.bf16.vlgmr.msra.gmra.mxu1 %v1138_v4 }
 0x3de   :  { %v1550_v15 = vpop.f32.mrf.mxu1 }
 0x3e0   :  { %v1551_v17 = vpop.f32.mrf.mxu1 }
 0x3e1   :  { %v1552_v18 = vadd.f32 %v1551_v17, %v1550_v15 }
 0x3e2   :  { %v1553_v19 = vpop.f32.mrf.mxu1 }
 0x3e3   :  { %v1015_v20 = vadd.f32 %v1552_v18, %v1488_v16 }
 0x3e4   :  { %v1554_v21 = vpop.f32.mrf.mxu1 }
 0x3e5   :  { %1020 = vst [vmem:[#allocation16] sm:$0xff] %v1015_v20 }
 0x3fe   :  { %v1244_v31 = vpop.f32.mrf.mxu1 }
 0x3ff   :  { %v1245_v23 = vadd.f32 %v1515_v22, %v1244_v31 }
 0x400   :  { %v1621_v45 = vpop.f32.mrf.mxu1 }
 0x401   :  { %v1251_v24 = vmin.f32 %v1245_v23, 0.0  ;;  %vm1250_vm8 = vcmp.gt.f32.partialorder %v1245_v23, 0.0 }
 0x402   :  { %v1247_v25 = vpop.f32.mrf.mxu1 }
 0x403   :  { %v1252_v26 = vmul.f32 1.442695, %v1251_v24 }
 0x404   :  { %v1622_v27 = vpop.f32.mrf.mxu1 }
 0x405   :  { %1834 = vpow2.f32 %v1252_v26 }
 0x412   :  { %v1835_v28 = vpop.eup %1834 }
 0x413   :  { %v1524_v29 = vadd.f32 -1.0, %v1835_v28 }
 0x415   :  { %v1255_v30 = vsel %vm1250_vm8, %v1245_v23, %v1524_v29 }
 0x416   :  { %v1256_v32 = vpack.c.bf16 %v1255_v30, %v1255_v30 }
 0x418   :  { %1640 = vmatmul.mubr.bf16.vlgmr.msra.gmra.mxu0 %v1256_v32 }
 0x419   :  { %2007 = shalt.err (!%p2004_p2)
}
 0x41a   :  { %1378 = dma.vmem_to_hbm [thread:$0]  %s1376_s19, 128, %s2283_s15, [#allocation4]   ;;  %v1525_v33 = vld [vmem:[%s2282_s14] ss:$0 sm:$0xff] }
 0x41b   :  { %s2066_s28 = smov [#allocation17]  }
 0x41c   :  { %s1385_s29 = sshll.u32 %s2066_s28, 4  ;;  %s1386_s29 = int_to_ptr.vmem [resolvable:$true] %s1385_s29 }
 0x41d   :  { %s2016_s30 = scalar_lea.vmem %s1386_s29, 128  ;;  %p2021_p4 = scmp.lt.s32.totalorder %s1386_s29, %s1386_s29 }
 0x41e   :  { %p2017_p3 = scmp.ne.s32.totalorder %s1386_s29, %s2016_s30  ;;  %p2022_p5 = scmp.lt.s32.totalorder %s2016_s30, %s2016_s30 }
 0x420   :  { %p2023_p6 = por %p2022_p5, %p2021_p4 }
 0x422   :  { %p2024_p7 = pnand %p2023_p6, %p2017_p3 }
 0x4d8   :  { %v1362_v34 = vpop.f32.mrf.mxu0 }
 0x4d9   :  { %v1363_v35 = vadd.f32 %v1525_v33, %v1362_v34 }
 0x4da   :  { %v1641_v36 = vpop.f32.mrf.mxu0 }
 0x4db   :  { %1368 = vst [vmem:[#allocation17] sm:$0xff] %v1363_v35 }
 0x4dc   :  { %v1365_v37 = vpop.f32.mrf.mxu0 }
 0x4dd   :  { %2027 = shalt.err (!%p2024_p7)
}
 0x4de   :  { %1388 = dma.vmem_to_hbm [thread:$0]  %s1386_s29, 128, %s2284_s16, [#allocation18]   ;;  %v1642_v38 = vpop.f32.mrf.mxu0 }
 0x4df   :  { %2046 = dma.done.wait [#allocation4], 128  }
 0x4e0   :  { %2047 = vsyncadd [#allocation4], 4294967168 }
 0x4e1   :  { %2048 = dma.done.wait [#allocation18], 128  }
 0x4e2   :  { %2049 = vsyncadd [#allocation18], 4294967168 }
 0x4e3   :  { %1395 = vsyncpa [#allocation3], 1 }
 0x4e4   :  { %1396 = vsyncpa [#allocation6], 1 }
 0x4e5   :  { %1397 = vsyncpa [#allocation9], 1 }
 0x4e6   :  { %1398 = vsyncpa [#allocation12], 1 }
 0x4e7   :  { %1399 = vsyncpa [#allocation15], 1 }
 0x4e8   :  { %1400 = vsyncpa [#allocation4], 1 }
 0x4e9   :  { %1401 = vsyncpa [#allocation18], 1 }

</bundles_post_ra>
